<compile_context>
chip_gen: v7x
topology: tpu7x:2x2x1
jax: 0.10.0
libtpu: 0.0.40
codegen_flags: <defaults>
</compile_context>

<pallas_src>
import functools
import math

import jax
import jax.numpy as jnp
from jax.experimental import pallas as pl
from jax.experimental.pallas import tpu as pltpu


def _round_up(a, b):
    return (a + b - 1) // b * b


def _ffn_kernel(x_ref, w1_ref, b1_ref, w2_ref, b2_ref, g_ref, beta_ref,
                o_ref, acc_ref, xbf_ref, *, eps, inv_d_model):
    k = pl.program_id(1)
    nk = pl.num_programs(1)

    @pl.when(k == 0)
    def _():
        acc_ref[...] = jnp.zeros_like(acc_ref)
        # Cast the (resident) f32 row tile to bf16 exactly once per row tile.
        xbf_ref[...] = x_ref[...].astype(jnp.bfloat16)

    # linear1 slab: (tm, d_model_p) @ (d_model_p, tk) -> f32
    h = jnp.dot(xbf_ref[...], w1_ref[...], preferred_element_type=jnp.float32)
    h = h + b1_ref[...]

    # exact (erf-based) GELU in f32, matching torch.nn.GELU() default
    h = 0.5 * h * (1.0 + jax.lax.erf(h * (1.0 / math.sqrt(2.0))))
    # dropout (eval mode) == identity

    # linear2 slab: (tm, tk) @ (tk, d_model_p) -> accumulate into VMEM scratch
    acc_ref[...] += jnp.dot(h.astype(jnp.bfloat16), w2_ref[...],
                            preferred_element_type=jnp.float32)

    @pl.when(k == nk - 1)
    def _():
        # Padded lanes of x, acc and b2 are all exactly zero, so sums over the padded
        # width equal sums over the true d_model.
        y = x_ref[...] + acc_ref[...] + b2_ref[...]
        mean = jnp.sum(y, axis=-1, keepdims=True) * inv_d_model
        var = jnp.sum(y * y, axis=-1, keepdims=True) * inv_d_model - mean * mean
        var = jnp.maximum(var, 0.0)
        inv = jax.lax.rsqrt(var + eps)
        o_ref[...] = ((y - mean) * inv * g_ref[...] + beta_ref[...]).astype(o_ref.dtype)


def feed_forward(x, w1, b1, w2, b2, gamma, beta, *, eps=1e-5, tm=256, tk=512):
    """x: [B, S, d_model] float32; w1: [d_model, dff]; w2: [dff, d_model].

    Weights are stored as [in_features, out_features] (PyTorch nn.Linear weight
    transposed).  Returns [B, S, d_model] float32.
    """
    B, S, d_model = x.shape
    dff = w1.shape[1]
    M = B * S

    # ---- padding / tile selection (lane dims -> multiples of 128) -----------
    d_model_p = _round_up(d_model, 128)
    dff_p = _round_up(dff, 128)

    tm_eff = min(tm, _round_up(M, 16))         # multiple of 16 (bf16 sublane packing)
    M_pad = _round_up(M, tm_eff)
    tk_eff = min(tk, dff_p)                    # multiple of 128 (lane)
    dff_pad = _round_up(dff_p, tk_eff)

    # ---- zero-padded operands (weights cast to bf16 for MXU + HBM/VMEM) -----
    x2d = jnp.zeros((M_pad, d_model_p), x.dtype).at[:M, :d_model].set(
        x.reshape(M, d_model))
    w1p = jnp.zeros((d_model_p, dff_pad), jnp.bfloat16).at[:d_model, :dff].set(
        w1.astype(jnp.bfloat16))
    b1p = jnp.zeros((1, dff_pad), jnp.float32).at[0, :dff].set(b1)
    w2p = jnp.zeros((dff_pad, d_model_p), jnp.bfloat16).at[:dff, :d_model].set(
        w2.astype(jnp.bfloat16))
    b2p = jnp.zeros((1, d_model_p), jnp.float32).at[0, :d_model].set(b2)
    gp = jnp.zeros((1, d_model_p), jnp.float32).at[0, :d_model].set(gamma)
    betap = jnp.zeros((1, d_model_p), jnp.float32).at[0, :d_model].set(beta)

    grid = (M_pad // tm_eff, dff_pad // tk_eff)

    # ---- VMEM budget (double-buffered inputs/outputs + scratch) -------------
    vmem_est = (2 * tm_eff * d_model_p * 4      # x tile (f32)
                + 2 * d_model_p * tk_eff * 2    # W1 slab (bf16)
                + 2 * tk_eff * 4                # b1 slab
                + 2 * tk_eff * d_model_p * 2    # W2 slab (bf16)
                + 2 * 3 * d_model_p * 4         # b2 / gamma / beta
                + 2 * tm_eff * d_model_p * 4    # output tile
                + tm_eff * d_model_p * 4        # f32 accumulator scratch
                + tm_eff * d_model_p * 2        # bf16 x scratch
                + tm_eff * tk_eff * 4)          # h intermediate
    vmem_limit = min(max(int(vmem_est * 1.5), 16 << 20), 48 << 20)

    cost = pl.CostEstimate(
        flops=4 * M * d_model * dff,
        transcendentals=M * dff,
        bytes_accessed=(2 * M * d_model * 4            # x in, out
                        + 2 * d_model * dff * 2        # W1 + W2 (bf16)
                        + (dff + 3 * d_model) * 4))    # biases / gamma / beta

    out = pl.pallas_call(
        functools.partial(_ffn_kernel, eps=eps, inv_d_model=1.0 / float(d_model)),
        out_shape=jax.ShapeDtypeStruct((M_pad, d_model_p), x.dtype),
        grid_spec=pltpu.PrefetchScalarGridSpec(
            num_scalar_prefetch=0,
            grid=grid,
            in_specs=[
                pl.BlockSpec((tm_eff, d_model_p), lambda i, k: (i, 0)),   # x tile
                pl.BlockSpec((d_model_p, tk_eff), lambda i, k: (0, k)),   # W1 slab
                pl.BlockSpec((1, tk_eff), lambda i, k: (0, k)),           # b1 slab
                pl.BlockSpec((tk_eff, d_model_p), lambda i, k: (k, 0)),   # W2 slab
                pl.BlockSpec((1, d_model_p), lambda i, k: (0, 0)),        # b2
                pl.BlockSpec((1, d_model_p), lambda i, k: (0, 0)),        # gamma
                pl.BlockSpec((1, d_model_p), lambda i, k: (0, 0)),        # beta
            ],
            out_specs=pl.BlockSpec((tm_eff, d_model_p), lambda i, k: (i, 0)),
            scratch_shapes=[
                pltpu.VMEM((tm_eff, d_model_p), jnp.float32),   # f32 accumulator
                pltpu.VMEM((tm_eff, d_model_p), jnp.bfloat16),  # cached bf16 x
            ],
        ),
        compiler_params=pltpu.CompilerParams(
            dimension_semantics=("parallel", "arbitrary"),
            vmem_limit_bytes=vmem_limit,
        ),
        cost_estimate=cost,
    )(x2d, w1p, b1p, w2p, b2p, gp, betap)

    return out[:M, :d_model].reshape(B, S, d_model)


def feed_forward_ref(x, w1, b1, w2, b2, gamma, beta, eps=1e-5):
    """Pure-JAX reference using the same bf16-matmul / f32-accumulate recipe."""
    h = jnp.dot(x.astype(jnp.bfloat16), w1.astype(jnp.bfloat16),
                preferred_element_type=jnp.float32) + b1
    h = 0.5 * h * (1.0 + jax.lax.erf(h / jnp.sqrt(2.0)))
    out = jnp.dot(h.astype(jnp.bfloat16), w2.astype(jnp.bfloat16),
                  preferred_element_type=jnp.float32) + b2
    y = x + out
    mean = jnp.mean(y, axis=-1, keepdims=True)
    var = jnp.mean((y - mean) ** 2, axis=-1, keepdims=True)
    return (y - mean) / jnp.sqrt(var + eps) * gamma + beta


if __name__ == "__main__":
    # Small shapes consistent with the module's forward: [batch, seq, d_model]
    batch, seq, d_model, dim_feedforward = 2, 8, 32, 64

    key = jax.random.PRNGKey(0)
    kx, k1, kb1, k2, kb2 = jax.random.split(key, 5)

    x = jax.random.normal(kx, (batch, seq, d_model), dtype=jnp.float32)

    # nn.Linear default init-ish (uniform), stored transposed: [in, out]
    lim1 = 1.0 / math.sqrt(d_model)
    w1 = jax.random.uniform(k1, (d_model, dim_feedforward), jnp.float32, -lim1, lim1)
    b1 = jax.random.uniform(kb1, (dim_feedforward,), jnp.float32, -lim1, lim1)
    lim2 = 1.0 / math.sqrt(dim_feedforward)
    w2 = jax.random.uniform(k2, (dim_feedforward, d_model), jnp.float32, -lim2, lim2)
    b2 = jax.random.uniform(kb2, (d_model,), jnp.float32, -lim2, lim2)

    gamma = jnp.ones((d_model,), jnp.float32)   # nn.LayerNorm weight
    beta = jnp.zeros((d_model,), jnp.float32)   # nn.LayerNorm bias

    out = feed_forward(x, w1, b1, w2, b2, gamma, beta)
    out = jax.block_until_ready(out)

    ref = feed_forward_ref(x, w1, b1, w2, b2, gamma, beta)
    assert out.shape == (batch, seq, d_model)
    assert jnp.allclose(out, ref, atol=1e-4, rtol=1e-4), "mismatch vs reference"

    print("KERNEL_OK")
</pallas_src>

<mosaic_0001>
module attributes {stable_mosaic.version = 11 : i64} {
  func.func @_ffn_kernel(%arg0: i32, %arg1: i32, %arg2: memref<16x128xf32, #tpu.memory_space<vmem>>, %arg3: memref<128x128xbf16, #tpu.memory_space<vmem>>, %arg4: memref<1x128xf32, #tpu.memory_space<vmem>>, %arg5: memref<128x128xbf16, #tpu.memory_space<vmem>>, %arg6: memref<1x128xf32, #tpu.memory_space<vmem>>, %arg7: memref<1x128xf32, #tpu.memory_space<vmem>>, %arg8: memref<1x128xf32, #tpu.memory_space<vmem>>, %arg9: memref<16x128xf32, #tpu.memory_space<vmem>>, %arg10: memref<16x128xf32, #tpu.memory_space<vmem>>, %arg11: memref<16x128xbf16, #tpu.memory_space<vmem>>) attributes {dimension_semantics = [#tpu.dimension_semantics<parallel>, #tpu.dimension_semantics<arbitrary>], iteration_bounds = array<i64: 1, 1>, scalar_prefetch = 0 : i64, scratch_operands = 2 : i64, tpu.core_type = #tpu.core_type<tc>, window_params = [{transform_indices = @transform_0, window_bounds = array<i64: 16, 128>}, {transform_indices = @transform_1, window_bounds = array<i64: 128, 128>}, {transform_indices = @transform_2, window_bounds = array<i64: 1, 128>}, {transform_indices = @transform_3, window_bounds = array<i64: 128, 128>}, {pipeline_mode = #tpu.pipeline_mode<synchronous>, transform_indices = @transform_4, window_bounds = array<i64: 1, 128>}, {pipeline_mode = #tpu.pipeline_mode<synchronous>, transform_indices = @transform_5, window_bounds = array<i64: 1, 128>}, {pipeline_mode = #tpu.pipeline_mode<synchronous>, transform_indices = @transform_6, window_bounds = array<i64: 1, 128>}, {transform_indices = @transform_7, window_bounds = array<i64: 16, 128>}]} {
    %c0_i32 = arith.constant 0 : i32
    %0 = arith.cmpi eq, %arg1, %c0_i32 : i32
    %1 = arith.extui %0 : i1 to i32
    %c0_i32_0 = arith.constant 0 : i32
    %2 = arith.cmpi ne, %1, %c0_i32_0 : i32
    scf.if %2 {
      %cst_18 = arith.constant 0.000000e+00 : f32
      %26 = vector.broadcast %cst_18 : f32 to vector<16x128xf32>
      %c0_19 = arith.constant 0 : index
      %c0_20 = arith.constant 0 : index
      %27 = vector.load %arg10[%c0_19, %c0_20] : memref<16x128xf32, #tpu.memory_space<vmem>>, vector<16x128xf32>
      tpu.vector_store %arg10[%c0_19, %c0_20], %26 {strides = array<i32>} : memref<16x128xf32, #tpu.memory_space<vmem>>, vector<16x128xf32>,
      %c0_21 = arith.constant 0 : index
      %c0_22 = arith.constant 0 : index
      %28 = vector.load %arg2[%c0_21, %c0_22] : memref<16x128xf32, #tpu.memory_space<vmem>>, vector<16x128xf32>
      %29 = arith.truncf %28 : vector<16x128xf32> to vector<16x128xbf16>
      %c0_23 = arith.constant 0 : index
      %c0_24 = arith.constant 0 : index
      %30 = vector.load %arg11[%c0_23, %c0_24] : memref<16x128xbf16, #tpu.memory_space<vmem>>, vector<16x128xbf16>
      tpu.vector_store %arg11[%c0_23, %c0_24], %29 {strides = array<i32>} : memref<16x128xbf16, #tpu.memory_space<vmem>>, vector<16x128xbf16>,
    } else {
    }
    %c0 = arith.constant 0 : index
    %c0_1 = arith.constant 0 : index
    %3 = vector.load %arg11[%c0, %c0_1] : memref<16x128xbf16, #tpu.memory_space<vmem>>, vector<16x128xbf16>
    %c0_2 = arith.constant 0 : index
    %c0_3 = arith.constant 0 : index
    %4 = vector.load %arg3[%c0_2, %c0_3] : memref<128x128xbf16, #tpu.memory_space<vmem>>, vector<128x128xbf16>
    %cst = arith.constant dense<0.000000e+00> : vector<16x128xf32>
    %5 = tpu.matmul %3, %4, %cst {dimension_numbers = #tpu.dot_dimension_numbers<[1], [0], [0], [1], [0, 0, 1, 1], [], []>} : vector<16x128xbf16>, vector<128x128xbf16>, vector<16x128xf32> -> vector<16x128xf32>
    %c0_4 = arith.constant 0 : index
    %c0_5 = arith.constant 0 : index
    %6 = vector.load %arg4[%c0_4, %c0_5] : memref<1x128xf32, #tpu.memory_space<vmem>>, vector<1x128xf32>
    %7 = vector.broadcast %6 : vector<1x128xf32> to vector<16x128xf32>
    %8 = arith.addf %5, %7 : vector<16x128xf32>
    %cst_6 = arith.constant 5.000000e-01 : f32
    %9 = vector.broadcast %cst_6 : f32 to vector<16x128xf32>
    %10 = arith.mulf %9, %8 : vector<16x128xf32>
    %cst_7 = arith.constant 0.707106769 : f32
    %11 = vector.broadcast %cst_7 : f32 to vector<16x128xf32>
    %12 = arith.mulf %8, %11 : vector<16x128xf32>
    %13 = math.erf %12 : vector<16x128xf32>
    %cst_8 = arith.constant 1.000000e+00 : f32
    %14 = vector.broadcast %cst_8 : f32 to vector<16x128xf32>
    %15 = arith.addf %14, %13 : vector<16x128xf32>
    %16 = arith.mulf %10, %15 : vector<16x128xf32>
    %c0_9 = arith.constant 0 : index
    %c0_10 = arith.constant 0 : index
    %17 = vector.load %arg10[%c0_9, %c0_10] : memref<16x128xf32, #tpu.memory_space<vmem>>, vector<16x128xf32>
    %18 = arith.truncf %16 : vector<16x128xf32> to vector<16x128xbf16>
    %c0_11 = arith.constant 0 : index
    %c0_12 = arith.constant 0 : index
    %19 = vector.load %arg5[%c0_11, %c0_12] : memref<128x128xbf16, #tpu.memory_space<vmem>>, vector<128x128xbf16>
    %cst_13 = arith.constant dense<0.000000e+00> : vector<16x128xf32>
    %20 = tpu.matmul %18, %19, %cst_13 {dimension_numbers = #tpu.dot_dimension_numbers<[1], [0], [0], [1], [0, 0, 1, 1], [], []>} : vector<16x128xbf16>, vector<128x128xbf16>, vector<16x128xf32> -> vector<16x128xf32>
    %21 = arith.addf %17, %20 : vector<16x128xf32>
    %c0_14 = arith.constant 0 : index
    %c0_15 = arith.constant 0 : index
    %22 = vector.load %arg10[%c0_14, %c0_15] : memref<16x128xf32, #tpu.memory_space<vmem>>, vector<16x128xf32>
    tpu.vector_store %arg10[%c0_14, %c0_15], %21 {strides = array<i32>} : memref<16x128xf32, #tpu.memory_space<vmem>>, vector<16x128xf32>,
    %c0_i32_16 = arith.constant 0 : i32
    %23 = arith.cmpi eq, %arg1, %c0_i32_16 : i32
    %24 = arith.extui %23 : i1 to i32
    %c0_i32_17 = arith.constant 0 : i32
    %25 = arith.cmpi ne, %24, %c0_i32_17 : i32
    scf.if %25 {
      %c0_18 = arith.constant 0 : index
      %c0_19 = arith.constant 0 : index
      %26 = vector.load %arg2[%c0_18, %c0_19] : memref<16x128xf32, #tpu.memory_space<vmem>>, vector<16x128xf32>
      %c0_20 = arith.constant 0 : index
      %c0_21 = arith.constant 0 : index
      %27 = vector.load %arg10[%c0_20, %c0_21] : memref<16x128xf32, #tpu.memory_space<vmem>>, vector<16x128xf32>
      %28 = arith.addf %26, %27 : vector<16x128xf32>
      %c0_22 = arith.constant 0 : index
      %c0_23 = arith.constant 0 : index
      %29 = vector.load %arg6[%c0_22, %c0_23] : memref<1x128xf32, #tpu.memory_space<vmem>>, vector<1x128xf32>
      %30 = vector.broadcast %29 : vector<1x128xf32> to vector<16x128xf32>
      %31 = arith.addf %28, %30 : vector<16x128xf32>
      %cst_24 = arith.constant dense<0.000000e+00> : vector<16xf32>
      %32 = vector.multi_reduction <add>, %31, %cst_24 [1] : vector<16x128xf32> to vector<16xf32>
      %33 = vector.shape_cast %32 : vector<16xf32> to vector<16x1xf32>
      %cst_25 = arith.constant 3.125000e-02 : f32
      %34 = vector.broadcast %cst_25 : f32 to vector<16x1xf32>
      %35 = arith.mulf %33, %34 : vector<16x1xf32>
      %36 = arith.mulf %31, %31 : vector<16x128xf32>
      %cst_26 = arith.constant dense<0.000000e+00> : vector<16xf32>
      %37 = vector.multi_reduction <add>, %36, %cst_26 [1] : vector<16x128xf32> to vector<16xf32>
      %38 = vector.shape_cast %37 : vector<16xf32> to vector<16x1xf32>
      %cst_27 = arith.constant 3.125000e-02 : f32
      %39 = vector.broadcast %cst_27 : f32 to vector<16x1xf32>
      %40 = arith.mulf %38, %39 : vector<16x1xf32>
      %41 = arith.mulf %35, %35 : vector<16x1xf32>
      %42 = arith.subf %40, %41 : vector<16x1xf32>
      %cst_28 = arith.constant 0.000000e+00 : f32
      %43 = vector.broadcast %cst_28 : f32 to vector<16x1xf32>
      %44 = arith.maximumf %42, %43 : vector<16x1xf32>
      %cst_29 = arith.constant 9.99999974E-6 : f32
      %45 = vector.broadcast %cst_29 : f32 to vector<16x1xf32>
      %46 = arith.addf %44, %45 : vector<16x1xf32>
      %47 = math.rsqrt %46 : vector<16x1xf32>
      %48 = vector.broadcast %35 : vector<16x1xf32> to vector<16x128xf32>
      %49 = arith.subf %31, %48 : vector<16x128xf32>
      %50 = vector.broadcast %47 : vector<16x1xf32> to vector<16x128xf32>
      %51 = arith.mulf %49, %50 : vector<16x128xf32>
      %c0_30 = arith.constant 0 : index
      %c0_31 = arith.constant 0 : index
      %52 = vector.load %arg7[%c0_30, %c0_31] : memref<1x128xf32, #tpu.memory_space<vmem>>, vector<1x128xf32>
      %53 = vector.broadcast %52 : vector<1x128xf32> to vector<16x128xf32>
      %54 = arith.mulf %51, %53 : vector<16x128xf32>
      %c0_32 = arith.constant 0 : index
      %c0_33 = arith.constant 0 : index
      %55 = vector.load %arg8[%c0_32, %c0_33] : memref<1x128xf32, #tpu.memory_space<vmem>>, vector<1x128xf32>
      %56 = vector.broadcast %55 : vector<1x128xf32> to vector<16x128xf32>
      %57 = arith.addf %54, %56 : vector<16x128xf32>
      %c0_34 = arith.constant 0 : index
      %c0_35 = arith.constant 0 : index
      %58 = vector.load %arg9[%c0_34, %c0_35] : memref<16x128xf32, #tpu.memory_space<vmem>>, vector<16x128xf32>
      tpu.vector_store %arg9[%c0_34, %c0_35], %57 {strides = array<i32>} : memref<16x128xf32, #tpu.memory_space<vmem>>, vector<16x128xf32>,
    } else {
    }
    return
  }
  func.func @transform_0(%arg0: i32, %arg1: i32) -> (i32, i32) {
    %c0_i32 = arith.constant 0 : i32
    %c0_i32_0 = arith.constant 0 : i32
    return %arg0, %c0_i32 : i32, i32
  }
  func.func @transform_1(%arg0: i32, %arg1: i32) -> (i32, i32) {
    %c0_i32 = arith.constant 0 : i32
    %c0_i32_0 = arith.constant 0 : i32
    return %c0_i32, %arg1 : i32, i32
  }
  func.func @transform_2(%arg0: i32, %arg1: i32) -> (i32, i32) {
    %c0_i32 = arith.constant 0 : i32
    %c0_i32_0 = arith.constant 0 : i32
    return %c0_i32, %arg1 : i32, i32
  }
  func.func @transform_3(%arg0: i32, %arg1: i32) -> (i32, i32) {
    %c0_i32 = arith.constant 0 : i32
    %c0_i32_0 = arith.constant 0 : i32
    return %arg1, %c0_i32 : i32, i32
  }
  func.func @transform_4(%arg0: i32, %arg1: i32) -> (i32, i32) {
    %c0_i32 = arith.constant 0 : i32
    %c0_i32_0 = arith.constant 0 : i32
    %c0_i32_1 = arith.constant 0 : i32
    return %c0_i32, %c0_i32_0 : i32, i32
  }
  func.func @transform_5(%arg0: i32, %arg1: i32) -> (i32, i32) {
    %c0_i32 = arith.constant 0 : i32
    %c0_i32_0 = arith.constant 0 : i32
    %c0_i32_1 = arith.constant 0 : i32
    return %c0_i32, %c0_i32_0 : i32, i32
  }
  func.func @transform_6(%arg0: i32, %arg1: i32) -> (i32, i32) {
    %c0_i32 = arith.constant 0 : i32
    %c0_i32_0 = arith.constant 0 : i32
    %c0_i32_1 = arith.constant 0 : i32
    return %c0_i32, %c0_i32_0 : i32, i32
  }
  func.func @transform_7(%arg0: i32, %arg1: i32) -> (i32, i32) {
    %c0_i32 = arith.constant 0 : i32
    %c0_i32_0 = arith.constant 0 : i32
    return %arg0, %c0_i32 : i32, i32
  }
}

</mosaic_0001>

<bundles_post_ra>
// kernel: tpu_custom_call.1
= control target key start
LH: loop header
LB: loop body
LE: loop exit
PB: predicated region body
PF: predicated region fallthrough
CT: control target
= control target key end

     0   :  { %12 = vsyncpa [#allocation5], 0  ;;  %s726_s0 = inlined_call_operand.hbm [shape: f32[16,128], index: 0, kind: input, shape index: {}]   ;;  %s727_s1 = inlined_call_operand.hbm [shape: bf16[128,128], index: 1, kind: input, shape index: {}]   ;;  %s728_s2 = inlined_call_operand.vmem [shape: f32[1,128], index: 2, kind: input, shape index: {}]   ;;  %s729_s3 = inlined_call_operand.hbm [shape: bf16[128,128], index: 3, kind: input, shape index: {}]   ;;  %s730_s4 = inlined_call_operand.vmem [shape: f32[1,128], index: 4, kind: input, shape index: {}]   ;;  %s731_s5 = inlined_call_operand.vmem [shape: f32[1,128], index: 5, kind: input, shape index: {}]   ;;  %s732_s6 = inlined_call_operand.vmem [shape: f32[1,128], index: 6, kind: input, shape index: {}]   ;;  %s733_s7 = inlined_call_operand.hbm [shape: f32[16,128], index: 7, kind: output, shape index: {}]  }
   0x1   :  { %13 = vsyncpa [#allocation8], 0 }
   0x2   :  { %14 = vsyncpa [#allocation6], 0  ;;  %s604_s24 = smov [#allocation7]   ;;  %s510_s28 = scalar_lea.hbm %s727_s1, 1024 }
   0x3   :  { %s32_s25 = sshll.u32 %s604_s24, 4  ;;  %p511_p0 = scmp.ne.s32.totalorder %s727_s1, %s510_s28  ;;  %s33_s25 = int_to_ptr.vmem [resolvable:$true] %s32_s25 }
   0x4   :  { %p514_p1 = scmp.lt.u32.totalorder %s510_s28, %s727_s1 }
   0x6   :  { %p516_p2 = pnand %p514_p1, %p511_p0 }
   0x8   :  { %519 = shalt.err (!%p516_p2)
}
   0x9   :  { %s520_s10 = scalar_lea.vmem %s33_s25, 1024  ;;  %p525_p4 = scmp.lt.s32.totalorder %s33_s25, %s33_s25 }
   0xa   :  { %p521_p3 = scmp.ne.s32.totalorder %s33_s25, %s520_s10  ;;  %p526_p5 = scmp.lt.s32.totalorder %s520_s10, %s520_s10 }
   0xc   :  { %p527_p6 = por %p526_p5, %p525_p4 }
   0xe   :  { %p528_p7 = pnand %p527_p6, %p521_p3 }
  0x10   :  { %531 = shalt.err (!%p528_p7)
}
  0x11   :  { %s605_s11 = smov 64   ;;  %s606_s12 = smov 4  }
  0x12   :  { %38 = dma.hbm_to_vmem [thread:$0]  %s727_s1, 1024, %s33_s25, [#allocation8], %s605_s11, %s605_s11, %s606_s12  }
  0x13   :  { %s607_s15 = smov [#allocation4]   ;;  %s532_s19 = scalar_lea.hbm %s726_s0, 256 }
  0x14   :  { %s20_s16 = sshll.u32 %s607_s15, 4  ;;  %p533_p8 = scmp.ne.s32.totalorder %s726_s0, %s532_s19  ;;  %s21_s16 = int_to_ptr.vmem [resolvable:$true] %s20_s16 }
  0x15   :  { %p536_p9 = scmp.lt.u32.totalorder %s532_s19, %s726_s0 }
  0x17   :  { %p538_p10 = pnand %p536_p9, %p533_p8 }
  0x19   :  { %541 = shalt.err (!%p538_p10)
}
  0x1a   :  { %s542_s24 = scalar_lea.vmem %s21_s16, 256  ;;  %p547_p12 = scmp.lt.s32.totalorder %s21_s16, %s21_s16 }
  0x1b   :  { %p543_p11 = scmp.ne.s32.totalorder %s21_s16, %s542_s24  ;;  %p548_p13 = scmp.lt.s32.totalorder %s542_s24, %s542_s24 }
  0x1d   :  { %p549_p0 = por %p548_p13, %p547_p12 }
  0x1f   :  { %p550_p1 = pnand %p549_p0, %p543_p11 }
  0x21   :  { %553 = shalt.err (!%p550_p1)
}
  0x22   :  { %s608_s1 = smov 128   ;;  %s609_s25 = smov 8  }
  0x23   :  { %26 = dma.hbm_to_vmem [thread:$0]  %s726_s0, 256, %s21_s16, [#allocation5], %s608_s1, %s608_s1, %s609_s25  }
  0x24   :  { %s610_s28 = smov [#allocation9]   ;;  %s554_s9 = scalar_lea.hbm %s729_s3, 1024 }
  0x25   :  { %s46_s29 = sshll.u32 %s610_s28, 4  ;;  %p555_p2 = scmp.ne.s32.totalorder %s729_s3, %s554_s9  ;;  %s47_s29 = int_to_ptr.vmem [resolvable:$true] %s46_s29 }
  0x26   :  { %p558_p3 = scmp.lt.u32.totalorder %s554_s9, %s729_s3 }
  0x28   :  { %p560_p4 = pnand %p558_p3, %p555_p2 }
  0x2a   :  { %563 = shalt.err (!%p560_p4)
}
  0x2b   :  { %s564_s17 = scalar_lea.vmem %s47_s29, 1024  ;;  %p569_p6 = scmp.lt.s32.totalorder %s47_s29, %s47_s29 }
  0x2c   :  { %p565_p5 = scmp.ne.s32.totalorder %s47_s29, %s564_s17  ;;  %p570_p7 = scmp.lt.s32.totalorder %s564_s17, %s564_s17 }
  0x2e   :  { %p571_p8 = por %p570_p7, %p569_p6 }
  0x30   :  { %p572_p9 = pnand %p571_p8, %p565_p5 }
  0x32   :  { %575 = shalt.err (!%p572_p9)
}
  0x33   :  { %52 = dma.hbm_to_vmem [thread:$0]  %s729_s3, 1024, %s47_s29, [#allocation8], %s605_s11, %s605_s11, %s606_s12  }
  0x34   :  { %598 = dma.done.wait [#allocation5], 256  }
  0x35   :  { %599 = vsyncadd [#allocation5], 4294967040 }
  0x36   :  { %600 = dma.done.wait [#allocation8], 2048  }
  0x37   :  { %601 = vsyncadd [#allocation8], 4294965248  ;;  %v611_v0 = vmov 0.0   ;;  %vm612_vm0 = vmmov 0   ;;  %v486_v1 = vld [vmem:[#allocation7] sm:$0xff]   ;;  %v487_v2 = vld [vmem:[#allocation7 + $0x8] sm:$0xff]  }
  0x38   :  { %436 = vmatprep.subr.bf16.mxu0 %v611_v0  ;;  %452 = vmatprep.mubr.msk.bf16.mxu0 %vm612_vm0, %v611_v0  ;;  %v488_v3 = vld [vmem:[#allocation7 + $0x10] sm:$0xff]   ;;  %v494_v4 = vld [vmem:[#allocation9] sm:$0xff]   ;;  %v489_v5 = vld [vmem:[#allocation7 + $0x18] sm:$0xff]   ;;  %s613_s21 = smov [#allocation10]  }
  0x39   :  { %456 = vmatprep.subr.bf16.mxu1 %v611_v0  ;;  %472 = vmatprep.mubr.msk.bf16.mxu1 %vm612_vm0, %v611_v0  ;;  %v495_v6 = vld [vmem:[#allocation9 + $0x8] sm:$0xff]   ;;  %v490_v7 = vld [vmem:[#allocation7 + $0x20] sm:$0xff]   ;;  %v492_v9 = vld [vmem:[#allocation7 + $0x30] sm:$0xff]   ;;  %s385_s22 = sshll.u32 %s613_s21, 4  ;;  %s386_s22 = int_to_ptr.vmem [resolvable:$true] %s385_s22 }
  0x3a   :  { %437 = vmatpush3.bf16.msra.mxu0 %v486_v1  ;;  %457 = vmatpush3.bf16.msra.mxu1 %v494_v4  ;;  %v491_v8 = vld [vmem:[#allocation7 + $0x28] sm:$0xff]   ;;  %v493_v10 = vld [vmem:[#allocation7 + $0x38] sm:$0xff]   ;;  %v75_v11 = vld [vmem:[#allocation4] sm:$0xff]  ;;  %s576_s23 = scalar_lea.vmem %s386_s22, 256  ;;  %p581_p11 = scmp.lt.s32.totalorder %s386_s22, %s386_s22 }
  0x3b   :  { %438 = vmatprep.subr.bf16.mxu0 %v611_v0  ;;  %458 = vmatprep.subr.bf16.mxu1 %v611_v0  ;;  %v76_v12 = vld [vmem:[#allocation4 + $0x8] sm:$0xff]  ;;  %v496_v14 = vld [vmem:[#allocation9 + $0x10] sm:$0xff]   ;;  %v498_v16 = vld [vmem:[#allocation9 + $0x20] sm:$0xff]   ;;  %p577_p10 = scmp.ne.s32.totalorder %s386_s22, %s576_s23  ;;  %p582_p12 = scmp.lt.s32.totalorder %s576_s23, %s576_s23 }
  0x3c   :  { %v77_v13 = vpack.c.bf16 %v76_v12, %v75_v11  ;;  %v497_v15 = vld [vmem:[#allocation9 + $0x18] sm:$0xff]   ;;  %v499_v17 = vld [vmem:[#allocation9 + $0x28] sm:$0xff]   ;;  %v500_v18 = vld [vmem:[#allocation9 + $0x30] sm:$0xff]  }
  0x3d   :  { %v501_v19 = vld [vmem:[#allocation9 + $0x38] sm:$0xff]   ;;  %v398_v20 = vld [vmem:[%s728_s2] ss:$0 sm:$0xff]  ;;  %p583_p13 = por %p582_p12, %p581_p11 }
  0x3e   :  { %439 = vmatpush3.bf16.msra.mxu0 %v487_v2  ;;  %459 = vmatpush3.bf16.msra.mxu1 %v495_v6  ;;  %v415_v39 = vld [vmem:[%s730_s4] ss:$0 sm:$0xff] }
  0x3f   :  { %440 = vmatprep.subr.bf16.mxu0 %v611_v0  ;;  %460 = vmatprep.subr.bf16.mxu1 %v611_v0  ;;  %p584_p0 = pnand %p583_p13, %p577_p10 }
  0x42   :  { %441 = vmatpush3.bf16.msra.mxu0 %v488_v3  ;;  %461 = vmatpush3.bf16.msra.mxu1 %v496_v14  ;;  %v416_v3 = vld [vmem:[%s731_s5] ss:$0 sm:$0xff] }
  0x43   :  { %442 = vmatprep.subr.bf16.mxu0 %v611_v0  ;;  %462 = vmatprep.subr.bf16.mxu1 %v611_v0 }
  0x46   :  { %443 = vmatpush3.bf16.msra.mxu0 %v489_v5  ;;  %463 = vmatpush3.bf16.msra.mxu1 %v497_v15  ;;  %v417_v5 = vld [vmem:[%s732_s6] ss:$0 sm:$0xff] }
  0x47   :  { %444 = vmatprep.subr.bf16.mxu0 %v611_v0  ;;  %464 = vmatprep.subr.bf16.mxu1 %v611_v0 }
  0x4a   :  { %445 = vmatpush3.bf16.msra.mxu0 %v490_v7  ;;  %465 = vmatpush3.bf16.msra.mxu1 %v498_v16 }
  0x4b   :  { %446 = vmatprep.subr.bf16.mxu0 %v611_v0  ;;  %466 = vmatprep.subr.bf16.mxu1 %v611_v0 }
  0x4e   :  { %447 = vmatpush3.bf16.msra.mxu0 %v491_v8  ;;  %467 = vmatpush3.bf16.msra.mxu1 %v499_v17 }
  0x4f   :  { %448 = vmatprep.subr.bf16.mxu0 %v611_v0  ;;  %468 = vmatprep.subr.bf16.mxu1 %v611_v0 }
  0x52   :  { %449 = vmatpush3.bf16.msra.mxu0 %v492_v9  ;;  %469 = vmatpush3.bf16.msra.mxu1 %v500_v18 }
  0x53   :  { %450 = vmatprep.subr.bf16.mxu0 %v611_v0  ;;  %470 = vmatprep.subr.bf16.mxu1 %v611_v0 }
  0x56   :  { %451 = vmatpush3.bf16.msra.mxu0 %v493_v10  ;;  %471 = vmatpush3.bf16.msra.mxu1 %v501_v19 }
  0x59   :  { %453 = vmatmul.mubr.bf16.vlgmr.msra.gmra.mrb[0].mxu0 %v77_v13 }
 0x12c   :  { %v185_v21 = vpop.f32.mrb[0].mxu0 }
 0x12d   :  { %v186_v22 = vadd.f32 %v398_v20, %v185_v21  ;;  %v454_v23 = vpop.f32.mrb[1].mxu0 }
 0x12e   :  { %v188_v24 = vpop.f32.mrb[2].mxu0 }
 0x12f   :  { %v194_v25 = vmul.f32 0.70710677, %v186_v22  ;;  %v189_v26 = vadd.f32 %v398_v20, %v188_v24  ;;  %v455_v27 = vpop.f32.mrb[3].mxu0  ;;  %v192_v32 = vmul.f32 0.5, %v186_v22 }
 0x131   :  { %502 = verf.f32 %v194_v25  ;;  %v195_v28 = vmul.f32 0.70710677, %v189_v26  ;;  %v193_v33 = vmul.f32 0.5, %v189_v26 }
 0x133   :  { %504 = verf.f32 %v195_v28 }
 0x13b   :  { %v503_v29 = vpop.eup %502 }
 0x13c   :  { %v198_v30 = vadd.f32 1.0, %v503_v29 }
 0x13d   :  { %v505_v31 = vpop.eup %504 }
 0x13e   :  { %v199_v34 = vadd.f32 1.0, %v505_v31  ;;  %v200_v35 = vmul.f32 %v198_v30, %v192_v32 }
 0x140   :  { %v201_v36 = vmul.f32 %v199_v34, %v193_v33 }
 0x142   :  { %v204_v37 = vpack.c.bf16 %v201_v36, %v200_v35 }
 0x144   :  { %473 = vmatmul.mubr.bf16.vlgmr.msra.gmra.mrb[0].mxu1 %v204_v37 }
 0x217   :  { %v303_v38 = vpop.f32.mrb[0].mxu1 }
 0x218   :  { %v321_v40 = vadd.f32 %v303_v38, %v75_v11  ;;  %v474_v41 = vpop.f32.mrb[1].mxu1 }
 0x219   :  { %v306_v42 = vpop.f32.mrb[2].mxu1 }
 0x21a   :  { %v330_v43 = vadd.f32 %v415_v39, %v321_v40  ;;  %v322_v44 = vadd.f32 %v306_v42, %v76_v12  ;;  %v475_v45 = vpop.f32.mrb[3].mxu1 }
 0x21c   :  { %v331_v46 = vadd.f32 %v415_v39, %v322_v44  ;;  %332 = vadd.xlane.f32.xlu0 %v330_v43  ;;  %v338_v47 = vmul.f32 %v330_v43, %v330_v43 }
 0x21e   :  { %340 = vadd.xlane.f32.xlu1 %v338_v47  ;;  %v339_v48 = vmul.f32 %v331_v46, %v331_v46 }
 0x220   :  { %334 = vadd.xlane.f32.xlu0 %v331_v46 }
 0x222   :  { %342 = vadd.xlane.f32.xlu1 %v339_v48 }
 0x2a9   :  { %v333_v49 = vpop.xlane.xlu0 %332 }
 0x2aa   :  { %v336_v50 = vmul.f32 0.03125, %v333_v49 }
 0x2ab   :  { %v341_v51 = vpop.xlane.xlu1 %340 }
 0x2ac   :  { %v346_v52 = vmul.f32 %v336_v50, %v336_v50  ;;  %v344_v53 = vmul.f32 0.03125, %v341_v51  ;;  %v356_v1 = vsub.f32 %v330_v43, %v336_v50 }
 0x2ad   :  { %v335_v54 = vpop.xlane.xlu0 %334 }
 0x2ae   :  { %v348_v55 = vsub.f32 %v344_v53, %v346_v52  ;;  %v337_v56 = vmul.f32 0.03125, %v335_v54 }
 0x2af   :  { %v343_v57 = vpop.xlane.xlu1 %342 }
 0x2b0   :  { %v350_v58 = vmax.f32 %v348_v55, 0.0  ;;  %v347_v59 = vmul.f32 %v337_v56, %v337_v56  ;;  %v345_v60 = vmul.f32 0.03125, %v343_v57  ;;  %v357_v6 = vsub.f32 %v331_v46, %v337_v56 }
 0x2b2   :  { %v352_v61 = vadd.f32 1e-05, %v350_v58  ;;  %v349_v62 = vsub.f32 %v345_v60, %v347_v59 }
 0x2b4   :  { %506 = vrsqrt.f32 %v352_v61  ;;  %v351_v63 = vmax.f32 %v349_v62, 0.0 }
 0x2b6   :  { %v353_v0 = vadd.f32 1e-05, %v351_v63 }
 0x2b8   :  { %508 = vrsqrt.f32 %v353_v0 }
 0x2be   :  { %v507_v2 = vpop.eup %506 }
 0x2bf   :  { %v358_v4 = vmul.f32 %v507_v2, %v356_v1 }
 0x2c1   :  { %v367_v7 = vmul.f32 %v416_v3, %v358_v4 }
 0x2c2   :  { %v509_v8 = vpop.eup %508 }
 0x2c3   :  { %v359_v9 = vmul.f32 %v509_v8, %v357_v6  ;;  %v376_v10 = vadd.f32 %v417_v5, %v367_v7 }
 0x2c5   :  { %v368_v11 = vmul.f32 %v416_v3, %v359_v9  ;;  %378 = vst [vmem:[#allocation10] sm:$0xff] %v376_v10 }
 0x2c7   :  { %v377_v12 = vadd.f32 %v417_v5, %v368_v11 }
 0x2c9   :  { %379 = vst [vmem:[#allocation10 + $0x8] sm:$0xff] %v377_v12 }
 0x2ca   :  { %587 = shalt.err (!%p584_p0)
}
 0x2cb   :  { %s588_s24 = scalar_lea.hbm %s733_s7, 256 }
 0x2cc   :  { %p589_p1 = scmp.ne.s32.totalorder %s733_s7, %s588_s24  ;;  %p592_p2 = scmp.lt.u32.totalorder %s588_s24, %s733_s7 }
 0x2ce   :  { %p594_p3 = pnand %p592_p2, %p589_p1 }
 0x2d0   :  { %597 = shalt.err (!%p594_p3)
}
 0x2d1   :  { %391 = dma.vmem_to_hbm [thread:$0]  %s386_s22, 256, %s733_s7, [#allocation6], %s608_s1, %s608_s1, %s609_s25  }
 0x2d2   :  { %602 = dma.done.wait [#allocation6], 256  }
 0x2d3   :  { %603 = vsyncadd [#allocation6], 4294967040 }
 0x2d4   :  { %395 = vsyncpa [#allocation5], 1 }
 0x2d5   :  { %396 = vsyncpa [#allocation8], 1 }
 0x2d6   :  { %397 = vsyncpa [#allocation6], 1 }

</bundles_post_ra>
